<compile_context>
chip_gen: v6e
topology: v6e:2x2x1
jax: 0.10.0
libtpu: 0.0.40
codegen_flags: <defaults>
</compile_context>

<pallas_src>
import jax
import jax.numpy as jnp
from jax.experimental import pallas as pl
from jax.experimental.pallas import tpu as pltpu

IN_DIM = 4      # fc1 input features (used directly, no lane pad)
HID_DIM = 100
OUT_DIM = 3

HID_PAD = 128   # one full lane width for the hidden layer (fills the MXU)
OUT_PAD = 8     # compact output width (>= OUT_DIM, sublane friendly)

NEG_BIG = -1e30  # "minus infinity" for padded logit lanes (finite -> no NaN risk)


def _round_up(a, b):
    return (a + b - 1) // b * b


def _choose_tiling(B, *, max_tile=4096, min_tile=8):
    """Pick (tile_b, B_pad) so padding waste is < 8 rows per tile and, when the
    batch allows it, there are >= 2 grid steps (megacore on v7x)."""
    B8 = _round_up(B, min_tile)
    n_tiles = pl.cdiv(B8, max_tile)
    if n_tiles == 1 and B8 >= 2 * min_tile:
        n_tiles = 2                      # give the second TensorCore work on v7x
    tile_b = _round_up(pl.cdiv(B8, n_tiles), min_tile)
    n_tiles = pl.cdiv(B8, tile_b)
    return tile_b, n_tiles * tile_b


def net_kernel(x_ref, w1_ref, b1_ref, w2_ref, b2_ref, o_ref):
    x = x_ref[...]                                                  # (tile_b, 4)

    # fc1: (tile_b, 4) @ (4, 128) + (1, 128)
    h = jnp.dot(x, w1_ref[...], preferred_element_type=jnp.float32) + b1_ref[...]

    # ReQU: clamp(min=0) ** 2   (padded hidden columns stay exactly 0)
    h = jnp.maximum(h, 0.0)
    h = h * h

    # fc2: (tile_b, 128) @ (128, 8) + (1, 8)
    z = jnp.dot(h, w2_ref[...], preferred_element_type=jnp.float32) + b2_ref[...]

    # LogSoftmax over the 3 real logits; the 5 padded lanes are forced to a
    # large negative value so exp() underflows to exactly 0 in the reduction.
    col = jax.lax.broadcasted_iota(jnp.int32, z.shape, 1)
    zm = jnp.where(col < OUT_DIM, z, NEG_BIG)
    m = jnp.max(zm, axis=-1, keepdims=True)
    s = zm - m
    lse = jnp.log(jnp.sum(jnp.exp(s), axis=-1, keepdims=True))
    o_ref[...] = s - lse                                            # (tile_b, 8)


def net_forward(x, w1, b1, w2, b2, *, max_tile_b=4096):
    """x: (B, 4); w1: (4, 100); b1: (1, 100); w2: (100, 3); b2: (1, 3)."""
    B = x.shape[0]
    x = x.astype(jnp.float32)

    tile_b, B_pad = _choose_tiling(B, max_tile=max_tile_b)

    # Pad only the batch (and only if needed) — no lane padding on x.
    x_p = x if B_pad == B else jnp.pad(x, ((0, B_pad - B), (0, 0)))

    # Tiny weight/bias pads (one-off, negligible traffic).
    w1_p = jnp.pad(w1.astype(jnp.float32), ((0, 0), (0, HID_PAD - HID_DIM)))
    b1_p = jnp.pad(b1.astype(jnp.float32), ((0, 0), (0, HID_PAD - HID_DIM)))
    w2_p = jnp.pad(w2.astype(jnp.float32),
                   ((0, HID_PAD - HID_DIM), (0, OUT_PAD - OUT_DIM)))
    b2_p = jnp.pad(b2.astype(jnp.float32), ((0, 0), (0, OUT_PAD - OUT_DIM)))

    grid = (B_pad // tile_b,)

    cost = pl.CostEstimate(
        flops=2 * B_pad * (IN_DIM * HID_PAD + HID_PAD * OUT_PAD)
              + B_pad * (3 * HID_PAD + 6 * OUT_PAD),
        transcendentals=B_pad * (OUT_PAD + 1),            # 8 exps + 1 log per row
        bytes_accessed=4 * (B_pad * IN_DIM + B_pad * OUT_PAD
                            + IN_DIM * HID_PAD + HID_PAD
                            + HID_PAD * OUT_PAD + OUT_PAD),
    )

    out_pad = pl.pallas_call(
        net_kernel,
        out_shape=jax.ShapeDtypeStruct((B_pad, OUT_PAD), jnp.float32),
        grid=grid,
        in_specs=[
            pl.BlockSpec((tile_b, IN_DIM), lambda i: (i, 0)),    # x tile (pipelined)
            pl.BlockSpec((IN_DIM, HID_PAD), lambda i: (0, 0)),   # w1 (resident)
            pl.BlockSpec((1, HID_PAD), lambda i: (0, 0)),        # b1 (resident)
            pl.BlockSpec((HID_PAD, OUT_PAD), lambda i: (0, 0)),  # w2 (resident)
            pl.BlockSpec((1, OUT_PAD), lambda i: (0, 0)),        # b2 (resident)
        ],
        out_specs=pl.BlockSpec((tile_b, OUT_PAD), lambda i: (i, 0)),
        compiler_params=pltpu.CompilerParams(
            dimension_semantics=("parallel",)),  # shards batch across TCs on v7x
        cost_estimate=cost,
    )(x_p, w1_p, b1_p, w2_p, b2_p)

    # Slice away batch and lane padding.
    return out_pad[:B, :OUT_DIM]


def init_params(key):
    # Deterministic init mimicking torch.nn.Linear defaults:
    # U(-1/sqrt(fan_in), 1/sqrt(fan_in)) for both weight and bias.
    k1, k2, k3, k4 = jax.random.split(key, 4)
    bound1 = 1.0 / jnp.sqrt(float(IN_DIM))
    bound2 = 1.0 / jnp.sqrt(float(HID_DIM))
    w1 = jax.random.uniform(k1, (IN_DIM, HID_DIM), jnp.float32, -bound1, bound1)
    b1 = jax.random.uniform(k2, (1, HID_DIM), jnp.float32, -bound1, bound1)
    w2 = jax.random.uniform(k3, (HID_DIM, OUT_DIM), jnp.float32, -bound2, bound2)
    b2 = jax.random.uniform(k4, (1, OUT_DIM), jnp.float32, -bound2, bound2)
    return w1, b1, w2, b2


def reference_forward(x, w1, b1, w2, b2):
    # Pure-JAX reference for a sanity check.
    h = x @ w1 + b1
    h = jnp.maximum(h, 0.0) ** 2
    z = h @ w2 + b2
    return jax.nn.log_softmax(z, axis=1)


if __name__ == "__main__":
    key = jax.random.PRNGKey(0)
    kx, kp = jax.random.split(key)

    B = 8
    x = jax.random.normal(kx, (B, IN_DIM), dtype=jnp.float32)
    w1, b1, w2, b2 = init_params(kp)

    out = net_forward(x, w1, b1, w2, b2)
    out = jax.block_until_ready(out)

    ref = reference_forward(x, w1, b1, w2, b2)
    assert out.shape == (B, OUT_DIM)
    assert jnp.allclose(out, ref, atol=1e-5, rtol=1e-5)

    print("KERNEL_OK")
</pallas_src>

<mosaic_0001>
module attributes {stable_mosaic.version = 11 : i64} {
  func.func @net_kernel(%arg0: i32, %arg1: memref<8x4xf32, #tpu.memory_space<vmem>>, %arg2: memref<4x128xf32, #tpu.memory_space<vmem>>, %arg3: memref<1x128xf32, #tpu.memory_space<vmem>>, %arg4: memref<128x8xf32, #tpu.memory_space<vmem>>, %arg5: memref<1x8xf32, #tpu.memory_space<vmem>>, %arg6: memref<8x8xf32, #tpu.memory_space<vmem>>) attributes {dimension_semantics = [#tpu.dimension_semantics<parallel>], iteration_bounds = array<i64: 1>, scalar_prefetch = 0 : i64, scratch_operands = 0 : i64, tpu.core_type = #tpu.core_type<tc>, window_params = [{transform_indices = @transform_0, window_bounds = array<i64: 8, 4>}, {pipeline_mode = #tpu.pipeline_mode<synchronous>, transform_indices = @transform_1, window_bounds = array<i64: 4, 128>}, {pipeline_mode = #tpu.pipeline_mode<synchronous>, transform_indices = @transform_2, window_bounds = array<i64: 1, 128>}, {pipeline_mode = #tpu.pipeline_mode<synchronous>, transform_indices = @transform_3, window_bounds = array<i64: 128, 8>}, {pipeline_mode = #tpu.pipeline_mode<synchronous>, transform_indices = @transform_4, window_bounds = array<i64: 1, 8>}, {transform_indices = @transform_5, window_bounds = array<i64: 8, 8>}]} {
    %c0 = arith.constant 0 : index
    %c0_0 = arith.constant 0 : index
    %0 = vector.load %arg1[%c0, %c0_0] : memref<8x4xf32, #tpu.memory_space<vmem>>, vector<8x4xf32>
    %c0_1 = arith.constant 0 : index
    %c0_2 = arith.constant 0 : index
    %1 = vector.load %arg2[%c0_1, %c0_2] : memref<4x128xf32, #tpu.memory_space<vmem>>, vector<4x128xf32>
    %cst = arith.constant dense<0.000000e+00> : vector<8x128xf32>
    %2 = tpu.matmul %0, %1, %cst {dimension_numbers = #tpu.dot_dimension_numbers<[1], [0], [0], [1], [0, 0, 1, 1], [], []>} : vector<8x4xf32>, vector<4x128xf32>, vector<8x128xf32> -> vector<8x128xf32>
    %c0_3 = arith.constant 0 : index
    %c0_4 = arith.constant 0 : index
    %3 = vector.load %arg3[%c0_3, %c0_4] : memref<1x128xf32, #tpu.memory_space<vmem>>, vector<1x128xf32>
    %4 = vector.broadcast %3 : vector<1x128xf32> to vector<8x128xf32>
    %5 = arith.addf %2, %4 : vector<8x128xf32>
    %cst_5 = arith.constant 0.000000e+00 : f32
    %6 = vector.broadcast %cst_5 : f32 to vector<8x128xf32>
    %7 = arith.maximumf %5, %6 : vector<8x128xf32>
    %8 = arith.mulf %7, %7 : vector<8x128xf32>
    %c0_6 = arith.constant 0 : index
    %c0_7 = arith.constant 0 : index
    %9 = vector.load %arg4[%c0_6, %c0_7] : memref<128x8xf32, #tpu.memory_space<vmem>>, vector<128x8xf32>
    %cst_8 = arith.constant dense<0.000000e+00> : vector<8x8xf32>
    %10 = tpu.matmul %8, %9, %cst_8 {dimension_numbers = #tpu.dot_dimension_numbers<[1], [0], [0], [1], [0, 0, 1, 1], [], []>} : vector<8x128xf32>, vector<128x8xf32>, vector<8x8xf32> -> vector<8x8xf32>
    %c0_9 = arith.constant 0 : index
    %c0_10 = arith.constant 0 : index
    %11 = vector.load %arg5[%c0_9, %c0_10] : memref<1x8xf32, #tpu.memory_space<vmem>>, vector<1x8xf32>
    %12 = vector.broadcast %11 : vector<1x8xf32> to vector<8x8xf32>
    %13 = arith.addf %10, %12 : vector<8x8xf32>
    %14 = tpu.iota {dimensions = array<i32: 1>} : vector<8x8xi32>
    %c3_i32 = arith.constant 3 : i32
    %15 = vector.broadcast %c3_i32 : i32 to vector<8x8xi32>
    %16 = arith.cmpi slt, %14, %15 : vector<8x8xi32>
    %cst_11 = arith.constant -1.000000e+30 : f32
    %17 = vector.broadcast %cst_11 : f32 to vector<8x8xf32>
    %18 = arith.select %16, %13, %17 : vector<8x8xi1>, vector<8x8xf32>
    %cst_12 = arith.constant dense<0xFF800000> : vector<8xf32>
    %19 = vector.multi_reduction <maximumf>, %18, %cst_12 [1] : vector<8x8xf32> to vector<8xf32>
    %20 = vector.shape_cast %19 : vector<8xf32> to vector<8x1xf32>
    %21 = vector.broadcast %20 : vector<8x1xf32> to vector<8x8xf32>
    %22 = arith.subf %18, %21 : vector<8x8xf32>
    %23 = math.exp %22 : vector<8x8xf32>
    %cst_13 = arith.constant dense<0.000000e+00> : vector<8xf32>
    %24 = vector.multi_reduction <add>, %23, %cst_13 [1] : vector<8x8xf32> to vector<8xf32>
    %25 = vector.shape_cast %24 : vector<8xf32> to vector<8x1xf32>
    %26 = math.log %25 : vector<8x1xf32>
    %27 = vector.broadcast %26 : vector<8x1xf32> to vector<8x8xf32>
    %28 = arith.subf %22, %27 : vector<8x8xf32>
    %c0_14 = arith.constant 0 : index
    %c0_15 = arith.constant 0 : index
    %29 = vector.load %arg6[%c0_14, %c0_15] : memref<8x8xf32, #tpu.memory_space<vmem>>, vector<8x8xf32>
    tpu.vector_store %arg6[%c0_14, %c0_15], %28 {strides = array<i32>} : memref<8x8xf32, #tpu.memory_space<vmem>>, vector<8x8xf32>,
    return
  }
  func.func @transform_0(%arg0: i32) -> (i32, i32) {
    %c0_i32 = arith.constant 0 : i32
    %c0_i32_0 = arith.constant 0 : i32
    return %arg0, %c0_i32 : i32, i32
  }
  func.func @transform_1(%arg0: i32) -> (i32, i32) {
    %c0_i32 = arith.constant 0 : i32
    %c0_i32_0 = arith.constant 0 : i32
    %c0_i32_1 = arith.constant 0 : i32
    return %c0_i32, %c0_i32_0 : i32, i32
  }
  func.func @transform_2(%arg0: i32) -> (i32, i32) {
    %c0_i32 = arith.constant 0 : i32
    %c0_i32_0 = arith.constant 0 : i32
    %c0_i32_1 = arith.constant 0 : i32
    return %c0_i32, %c0_i32_0 : i32, i32
  }
  func.func @transform_3(%arg0: i32) -> (i32, i32) {
    %c0_i32 = arith.constant 0 : i32
    %c0_i32_0 = arith.constant 0 : i32
    %c0_i32_1 = arith.constant 0 : i32
    return %c0_i32, %c0_i32_0 : i32, i32
  }
  func.func @transform_4(%arg0: i32) -> (i32, i32) {
    %c0_i32 = arith.constant 0 : i32
    %c0_i32_0 = arith.constant 0 : i32
    %c0_i32_1 = arith.constant 0 : i32
    return %c0_i32, %c0_i32_0 : i32, i32
  }
  func.func @transform_5(%arg0: i32) -> (i32, i32) {
    %c0_i32 = arith.constant 0 : i32
    %c0_i32_0 = arith.constant 0 : i32
    return %arg0, %c0_i32 : i32, i32
  }
}

</mosaic_0001>

<bundles_post_ra>
// kernel: tpu_custom_call.1
= control target key start
LH: loop header
LB: loop body
LE: loop exit
PB: predicated region body
PF: predicated region fallthrough
CT: control target
= control target key end

     0   :  { %vm34_vm0 = vcmask 1043456   ;;  %v327_v2 = vmov 0.0   ;;  %vm328_vm1 = vmmov 0   ;;  %vm30_vm2 = vcmask 31744   ;;  %s426_s0 = inlined_call_operand.vmem [shape: f32[8,4], index: 0, kind: input, shape index: {}]   ;;  %s427_s1 = inlined_call_operand.vmem [shape: f32[4,128], index: 1, kind: input, shape index: {}]   ;;  %s428_s2 = inlined_call_operand.vmem [shape: f32[1,128], index: 2, kind: input, shape index: {}]   ;;  %s429_s3 = inlined_call_operand.vmem [shape: f32[128,8], index: 3, kind: input, shape index: {}]   ;;  %s430_s4 = inlined_call_operand.vmem [shape: f32[1,8], index: 4, kind: input, shape index: {}]   ;;  %s431_s5 = inlined_call_operand.hbm [shape: f32[8,8], index: 5, kind: output, shape index: {}]  }
   0x1   :  { %v22_v0 = vld [vmem:[%s427_s1] sm:$0xf]  ;;  %258 = vmatprep.subr.mxu0 %v327_v2  ;;  %260 = vmatprep.mubr.msk.f32.mxu0 %vm328_vm1, %v327_v2  ;;  %v125_v3 = vld [vmem:[%s429_s3 + $0x78] sm:$0xff]  ;;  %v124_v4 = vld [vmem:[%s429_s3 + $0x70] sm:$0xff] }
   0x2   :  { %v21_v1 = vld [vmem:[%s426_s0] sm:$0xff]  ;;  %259 = vmatpush3.msk.msra.mxu0 %vm34_vm0, %v22_v0  ;;  %263 = vmatprep.subr.mxu1 %v327_v2  ;;  %v123_v5 = vld [vmem:[%s429_s3 + $0x68] sm:$0xff] }
   0x3   :  { %261 = vmatmul.mubr.msk.f32.vlgmr.msra.gmra.mxu0 %vm30_vm2, %v21_v1  ;;  %264 = vmatpush3.msra.mxu1 %v125_v3 }
   0x4   :  { %265 = vmatprep.subr.mxu1 %v327_v2  ;;  %295 = vmatprep.mubr.msk.f32.mxu1 %vm328_vm1, %v327_v2 }
   0x5   :  { %266 = vmatpush3.msra.mxu1 %v124_v4 }
   0x6   :  { %10 = vsyncpa [#allocation3], 0  ;;  %267 = vmatprep.subr.mxu1 %v327_v2  ;;  %v122_v6 = vld [vmem:[%s429_s3 + $0x60] sm:$0xff]  ;;  %v121_v7 = vld [vmem:[%s429_s3 + $0x58] sm:$0xff]  ;;  %v203_v25 = vlaneseq  ;;  %vm207_vm4 = vcmask 64512  }
   0x7   :  { %268 = vmatpush3.msra.mxu1 %v123_v5  ;;  %v120_v8 = vld [vmem:[%s429_s3 + $0x50] sm:$0xff]  ;;  %v119_v9 = vld [vmem:[%s429_s3 + $0x48] sm:$0xff]  ;;  %v118_v10 = vld [vmem:[%s429_s3 + $0x40] sm:$0xff] }
   0x8   :  { %269 = vmatprep.subr.mxu1 %v327_v2  ;;  %v117_v11 = vld [vmem:[%s429_s3 + $0x38] sm:$0xff]  ;;  %v116_v12 = vld [vmem:[%s429_s3 + $0x30] sm:$0xff]  ;;  %v115_v13 = vld [vmem:[%s429_s3 + $0x28] sm:$0xff]  ;;  %v204_v26 = vand.u32 127, %v203_v25 }
   0x9   :  { %270 = vmatpush3.msra.mxu1 %v122_v6  ;;  %v114_v14 = vld [vmem:[%s429_s3 + $0x20] sm:$0xff]  ;;  %v113_v15 = vld [vmem:[%s429_s3 + $0x18] sm:$0xff]  ;;  %v112_v16 = vld [vmem:[%s429_s3 + $0x10] sm:$0xff] }
   0xa   :  { %271 = vmatprep.subr.mxu1 %v327_v2  ;;  %v111_v17 = vld [vmem:[%s429_s3 + $0x8] sm:$0xff]  ;;  %v110_v18 = vld [vmem:[%s429_s3] sm:$0xff]  ;;  %vm205_vm3 = vcmp.lt.s32.totalorder %v204_v26, 3 }
   0xb   :  { %272 = vmatpush3.msra.mxu1 %v121_v7  ;;  %v235_v19 = vld [vmem:[%s428_s2] ss:$0 sm:$0xff]  ;;  %s329_s2 = smov [#allocation2]  }
   0xc   :  { %273 = vmatprep.subr.mxu1 %v327_v2  ;;  %v238_v27 = vld [vmem:[%s430_s4] ss:$0 sm:$0xff]  ;;  %s227_s3 = sshll.u32 %s329_s2, 4  ;;  %s228_s3 = int_to_ptr.vmem [resolvable:$true] %s227_s3 }
   0xd   :  { %274 = vmatpush3.msra.mxu1 %v120_v8  ;;  %s305_s4 = scalar_lea.vmem %s228_s3, 128  ;;  %p310_p1 = scmp.lt.s32.totalorder %s228_s3, %s228_s3 }
   0xe   :  { %275 = vmatprep.subr.mxu1 %v327_v2  ;;  %p306_p0 = scmp.ne.s32.totalorder %s228_s3, %s305_s4  ;;  %p311_p2 = scmp.lt.s32.totalorder %s305_s4, %s305_s4 }
   0xf   :  { %276 = vmatpush3.msra.mxu1 %v119_v9 }
  0x10   :  { %277 = vmatprep.subr.mxu1 %v327_v2  ;;  %p312_p3 = por %p311_p2, %p310_p1 }
  0x11   :  { %278 = vmatpush3.msra.mxu1 %v118_v10 }
  0x12   :  { %279 = vmatprep.subr.mxu1 %v327_v2  ;;  %p313_p4 = pnand %p312_p3, %p306_p0 }
  0x13   :  { %280 = vmatpush3.msra.mxu1 %v117_v11 }
  0x14   :  { %281 = vmatprep.subr.mxu1 %v327_v2 }
  0x15   :  { %282 = vmatpush3.msra.mxu1 %v116_v12 }
  0x16   :  { %283 = vmatprep.subr.mxu1 %v327_v2 }
  0x17   :  { %284 = vmatpush3.msra.mxu1 %v115_v13 }
  0x18   :  { %285 = vmatprep.subr.mxu1 %v327_v2 }
  0x19   :  { %286 = vmatpush3.msra.mxu1 %v114_v14 }
  0x1a   :  { %287 = vmatprep.subr.mxu1 %v327_v2 }
  0x1b   :  { %288 = vmatpush3.msra.mxu1 %v113_v15 }
  0x1c   :  { %289 = vmatprep.subr.mxu1 %v327_v2 }
  0x1d   :  { %290 = vmatpush3.msra.mxu1 %v112_v16 }
  0x1e   :  { %291 = vmatprep.subr.mxu1 %v327_v2 }
  0x1f   :  { %292 = vmatpush3.msra.mxu1 %v111_v17 }
  0x20   :  { %293 = vmatprep.subr.mxu1 %v327_v2 }
  0x21   :  { %294 = vmatpush3.msra.mxu1 %v110_v18 }
  0xc3   :  { %v104_v20 = vpop.f32.mrf.mxu0 }
  0xc4   :  { %v105_v21 = vadd.f32 %v235_v19, %v104_v20 }
  0xc5   :  { %v262_v22 = vpop.f32.mrf.mxu0 }
  0xc6   :  { %v108_v23 = vmax.f32 %v105_v21, 0.0 }
  0xc8   :  { %v109_v24 = vmul.f32 %v108_v23, %v108_v23 }
  0xca   :  { %296 = vmatmul.mubr.f32.vlgmr.msra.gmra.mxu1 %v109_v24 }
 0x18a   :  { %v199_v28 = vpop.f32.mrf.mxu1 }
 0x18b   :  { %v200_v29 = vadd.f32 %v238_v27, %v199_v28 }
 0x18c   :  { %v297_v30 = vpop.f32.mrf.mxu1 }
 0x18d   :  { %v206_v31 = vsel %vm205_vm3, %v200_v29, -1e+30 }
 0x18e   :  { %v208_v32 = vsel %vm207_vm4, %v206_v31, -inf }
 0x18f   :  { %209 = vmax.xlane.f32.xlu0 %v208_v32 }
 0x218   :  { %v210_v33 = vpop.xlane.xlu0 %209 }
 0x219   :  { %v211_v34 = vsub.f32 %v206_v31, %v210_v33 }
 0x21b   :  { %v212_v35 = vmul.f32 1.442695, %v211_v34 }
 0x21d   :  { %301 = vpow2.f32 %v212_v35 }
 0x22a   :  { %v302_v36 = vpop.eup %301 }
 0x22b   :  { %v214_v37 = vsel %vm207_vm4, %v302_v36, 0.0 }
 0x22c   :  { %215 = vadd.xlane.f32.xlu0 %v214_v37 }
 0x2b5   :  { %v216_v38 = vpop.xlane.xlu0 %215 }
 0x2b6   :  { %303 = vlog2.f32 %v216_v38 }
 0x2c3   :  { %v304_v39 = vpop.eup %303 }
 0x2c4   :  { %v218_v40 = vmul.f32 0.6931472, %v304_v39 }
 0x2c6   :  { %v219_v41 = vsub.f32 %v211_v34, %v218_v40 }
 0x2c8   :  { %220 = vst.msk [vmem:[#allocation2] sm:$0xff] %vm207_vm4, %v219_v41 }
 0x2c9   :  { %316 = shalt.err (!%p313_p4)
}
 0x2ca   :  { %230 = dma.vmem_to_hbm [thread:$0]  %s228_s3, 128, %s431_s5, [#allocation3]  }
 0x2cb   :  { %325 = dma.done.wait [#allocation3], 128  }
 0x2cc   :  { %326 = vsyncadd [#allocation3], 4294967168 }
 0x2cd   :  { %234 = vsyncpa [#allocation3], 1 }

</bundles_post_ra>
